<compile_context>
chip_gen: v7x
topology: tpu7x:2x2x1
jax: 0.10.0
libtpu: 0.0.40
codegen_flags: <defaults>
</compile_context>

<pallas_src>
import functools
from typing import NamedTuple

import jax
import jax.numpy as jnp
from jax.experimental import pallas as pl
from jax.experimental.pallas import tpu as pltpu


def _round_up(x: int, m: int) -> int:
    return ((x + m - 1) // m) * m


def _vmem_capacity_bytes() -> int:
    """Generation-aware physical VMEM (128 MiB on v5e/v6e, 64 MiB on v7x)."""
    try:
        cap = getattr(pltpu.get_tpu_info(), "vmem_capacity_bytes", None)
        if cap:
            return int(cap)
    except Exception:
        pass
    return 64 * 1024 * 1024  # conservative fallback = v7x physical VMEM


class FNNConfig(NamedTuple):
    in1: int      # num_hist * emb_size (unpadded)
    hid: int      # hidden size (unpadded)
    nwords: int   # vocab size (unpadded)
    kp: int       # padded input-feature dim
    hp: int       # padded hidden dim
    np_: int      # padded vocab dim (multiple of tile_n)
    tile_m: int   # max batch tile
    tile_n: int   # vocab tile (multiple of 128)


def fnn_lm_kernel(feat_ref, w1_ref, b1_ref, w2_ref, b2_ref, out_ref):
    """One (vocab tile, batch tile) of:  tanh(feat @ W1 + b1) @ W2 + b2."""
    # The hidden GEMM is tiny (Kp x Hp << vocab), so recompute it per tile:
    # no scratch carry, no pl.when, and both grid axes stay "parallel" so the
    # vocab stream can be sharded across both v7x TensorCores.
    h = jnp.dot(feat_ref[...], w1_ref[...],
                preferred_element_type=jnp.float32) + b1_ref[...]
    # TODO(synk): nn.Dropout is identity at inference; training-mode dropout
    # (pltpu.prng_random_bits mask) intentionally omitted.
    h = jnp.tanh(h).astype(w2_ref.dtype)
    logits = jnp.dot(h, w2_ref[...],
                     preferred_element_type=jnp.float32) + b2_ref[...]
    out_ref[...] = logits.astype(out_ref.dtype)


def prepare_params(emb_table, w1, b1, w2, b2, *,
                   compute_dtype=jnp.bfloat16, tile_m=256, tile_n=1024):
    """One-time parameter prep (do NOT call per step).

    Linear weights are stored TRANSPOSED vs PyTorch:
      w1: (num_hist*emb, hid), w2: (hid, nwords)
    so the kernel computes feat @ W1 and h @ W2 directly on the MXU.
    """
    nwords, _ = emb_table.shape
    in1, hid = w1.shape
    assert w2.shape == (hid, nwords)

    cdt = jnp.dtype(compute_dtype)
    cb = cdt.itemsize

    kp = _round_up(in1, 128)   # W1 is VMEM-resident; keep full-K MXU passes
    hp = _round_up(hid, 16)    # only to the bf16 sublane pack — W2 is streamed

    # Pick the vocab tile against the generation-specific VMEM capacity.
    vmem_budget = int(0.6 * _vmem_capacity_bytes())
    resident = 2 * (tile_m * kp * cb + kp * hp * cb + hp * 4)     # feat/W1/b1 (x2 buf)
    per_tn = 2 * (hp * cb + 4 + tile_m * 4)                       # W2 col + b2 + f32 out (x2 buf)
    max_tn = max(128, ((vmem_budget - resident) // per_tn) // 128 * 128)
    tn = max(128, (min(tile_n, _round_up(nwords, 128), max_tn) // 128) * 128)
    np_ = _round_up(nwords, tn)

    params = dict(
        emb=emb_table.astype(cdt),   # gathered per call; cast once here
        w1=jnp.pad(w1, ((0, kp - in1), (0, hp - hid))).astype(cdt),
        b1=jnp.pad(b1.reshape(1, hid),
                   ((0, 0), (0, hp - hid))).astype(jnp.float32),
        w2=jnp.pad(w2, ((0, hp - hid), (0, np_ - nwords))).astype(cdt),
        b2=jnp.pad(b2.reshape(1, nwords),
                   ((0, 0), (0, np_ - nwords))).astype(jnp.float32),
    )
    cfg = FNNConfig(in1=in1, hid=hid, nwords=nwords, kp=kp, hp=hp, np_=np_,
                    tile_m=tile_m, tile_n=tn)
    return params, cfg


@functools.partial(jax.jit, static_argnums=(2,))
def fnn_lm_forward(words, params, cfg: FNNConfig):
    """words: (B, num_hist) int32 -> logits (B, nwords) float32."""
    B = words.shape[0]
    cdt = params["w1"].dtype

    # Embedding lookup + flatten (plain-JAX glue).
    # TODO(synk): fuse the gather into the kernel (scalar-prefetch word ids +
    # per-row DMA gather from an HBM-resident emb table) to remove this extra
    # HBM round trip; minor for small batches.
    feat = jnp.take(params["emb"], words, axis=0).reshape(B, -1)

    TM = min(cfg.tile_m, _round_up(B, 16))   # 16 = bf16 sublane pack
    TN = cfg.tile_n
    Mp = _round_up(B, TM)
    Np, Kp, Hp = cfg.np_, cfg.kp, cfg.hp

    feat_p = jnp.pad(feat, ((0, Mp - B), (0, Kp - cfg.in1))).astype(cdt)

    # Grid: vocab tiles OUTER, batch tiles INNER.  W2's block index depends
    # only on the outer axis, so each W2 column slab is DMA'd exactly once.
    grid = (Np // TN, Mp // TM)

    out = pl.pallas_call(
        fnn_lm_kernel,
        out_shape=jax.ShapeDtypeStruct((Mp, Np), jnp.float32),
        grid_spec=pltpu.PrefetchScalarGridSpec(
            num_scalar_prefetch=0,
            grid=grid,
            in_specs=[
                pl.BlockSpec((TM, Kp), lambda j, i: (i, 0)),   # feat
                pl.BlockSpec((Kp, Hp), lambda j, i: (0, 0)),   # W1 (VMEM-resident)
                pl.BlockSpec((1, Hp),  lambda j, i: (0, 0)),   # b1 (resident)
                pl.BlockSpec((Hp, TN), lambda j, i: (0, j)),   # W2 column stream
                pl.BlockSpec((1, TN),  lambda j, i: (0, j)),   # b2 slice
            ],
            out_specs=pl.BlockSpec((TM, TN), lambda j, i: (i, j)),
        ),
        compiler_params=pltpu.CompilerParams(
            dimension_semantics=("parallel", "parallel"),
            vmem_limit_bytes=int(0.75 * _vmem_capacity_bytes())),
    )(feat_p, params["w1"], params["b1"], params["w2"], params["b2"])

    return out[:B, :cfg.nwords]


def init_params(key, nwords, emb_size, hid_size, num_hist):
    k_emb, k_w1, k_b1, k_w2, k_b2 = jax.random.split(key, 5)
    in1 = num_hist * emb_size
    emb_table = jax.random.normal(k_emb, (nwords, emb_size), jnp.float32)
    lim1 = 1.0 / jnp.sqrt(in1)
    w1 = jax.random.uniform(k_w1, (in1, hid_size), jnp.float32, -lim1, lim1)
    b1 = jax.random.uniform(k_b1, (hid_size,), jnp.float32, -lim1, lim1)
    lim2 = 1.0 / jnp.sqrt(hid_size)
    w2 = jax.random.uniform(k_w2, (hid_size, nwords), jnp.float32, -lim2, lim2)
    b2 = jax.random.uniform(k_b2, (nwords,), jnp.float32, -lim2, lim2)
    return emb_table, w1, b1, w2, b2


if __name__ == "__main__":
    # Small, forward-consistent sizes.
    nwords, emb_size, hid_size, num_hist = 256, 32, 64, 4
    batch = 8

    key = jax.random.PRNGKey(0)
    k_params, k_words = jax.random.split(key)
    emb_table, w1, b1, w2, b2 = init_params(
        k_params, nwords, emb_size, hid_size, num_hist)
    words = jax.random.randint(k_words, (batch, num_hist), 0, nwords, jnp.int32)

    # One-time parameter prep (pad / transpose-layout / bf16 cast).
    params, cfg = prepare_params(emb_table, w1, b1, w2, b2)

    logits = fnn_lm_forward(words, params, cfg)
    logits = jax.block_until_ready(logits)

    # Pure-JAX f32 reference (kernel uses bf16 inputs + f32 accumulation, so
    # tolerance is set accordingly).
    feat_ref = jnp.take(emb_table, words, axis=0).reshape(batch, -1)
    ref = jnp.tanh(feat_ref @ w1 + b1) @ w2 + b2
    assert logits.shape == (batch, nwords)
    assert jnp.allclose(logits, ref, atol=5e-2, rtol=5e-2), float(
        jnp.max(jnp.abs(logits - ref)))

    print("KERNEL_OK")
</pallas_src>

<mosaic_0001>
module attributes {stable_mosaic.version = 11 : i64} {
  func.func @fnn_lm_kernel(%arg0: i32, %arg1: i32, %arg2: memref<16x128xbf16, #tpu.memory_space<vmem>>, %arg3: memref<128x64xbf16, #tpu.memory_space<vmem>>, %arg4: memref<1x64xf32, #tpu.memory_space<vmem>>, %arg5: memref<64x256xbf16, #tpu.memory_space<vmem>>, %arg6: memref<1x256xf32, #tpu.memory_space<vmem>>, %arg7: memref<16x256xf32, #tpu.memory_space<vmem>>) attributes {dimension_semantics = [#tpu.dimension_semantics<parallel>, #tpu.dimension_semantics<parallel>], iteration_bounds = array<i64: 1, 1>, scalar_prefetch = 0 : i64, scratch_operands = 0 : i64, tpu.core_type = #tpu.core_type<tc>, window_params = [{transform_indices = @transform_0, window_bounds = array<i64: 16, 128>}, {pipeline_mode = #tpu.pipeline_mode<synchronous>, transform_indices = @transform_1, window_bounds = array<i64: 128, 64>}, {pipeline_mode = #tpu.pipeline_mode<synchronous>, transform_indices = @transform_2, window_bounds = array<i64: 1, 64>}, {transform_indices = @transform_3, window_bounds = array<i64: 64, 256>}, {transform_indices = @transform_4, window_bounds = array<i64: 1, 256>}, {transform_indices = @transform_5, window_bounds = array<i64: 16, 256>}]} {
    %c0 = arith.constant 0 : index
    %c0_0 = arith.constant 0 : index
    %0 = vector.load %arg2[%c0, %c0_0] : memref<16x128xbf16, #tpu.memory_space<vmem>>, vector<16x128xbf16>
    %c0_1 = arith.constant 0 : index
    %c0_2 = arith.constant 0 : index
    %1 = vector.load %arg3[%c0_1, %c0_2] : memref<128x64xbf16, #tpu.memory_space<vmem>>, vector<128x64xbf16>
    %cst = arith.constant dense<0.000000e+00> : vector<16x64xf32>
    %2 = tpu.matmul %0, %1, %cst {dimension_numbers = #tpu.dot_dimension_numbers<[1], [0], [0], [1], [0, 0, 1, 1], [], []>} : vector<16x128xbf16>, vector<128x64xbf16>, vector<16x64xf32> -> vector<16x64xf32>
    %c0_3 = arith.constant 0 : index
    %c0_4 = arith.constant 0 : index
    %3 = vector.load %arg4[%c0_3, %c0_4] : memref<1x64xf32, #tpu.memory_space<vmem>>, vector<1x64xf32>
    %4 = vector.broadcast %3 : vector<1x64xf32> to vector<16x64xf32>
    %5 = arith.addf %2, %4 : vector<16x64xf32>
    %6 = math.tanh %5 : vector<16x64xf32>
    %7 = arith.truncf %6 : vector<16x64xf32> to vector<16x64xbf16>
    %c0_5 = arith.constant 0 : index
    %c0_6 = arith.constant 0 : index
    %8 = vector.load %arg5[%c0_5, %c0_6] : memref<64x256xbf16, #tpu.memory_space<vmem>>, vector<64x256xbf16>
    %cst_7 = arith.constant dense<0.000000e+00> : vector<16x256xf32>
    %9 = tpu.matmul %7, %8, %cst_7 {dimension_numbers = #tpu.dot_dimension_numbers<[1], [0], [0], [1], [0, 0, 1, 1], [], []>} : vector<16x64xbf16>, vector<64x256xbf16>, vector<16x256xf32> -> vector<16x256xf32>
    %c0_8 = arith.constant 0 : index
    %c0_9 = arith.constant 0 : index
    %10 = vector.load %arg6[%c0_8, %c0_9] : memref<1x256xf32, #tpu.memory_space<vmem>>, vector<1x256xf32>
    %11 = vector.broadcast %10 : vector<1x256xf32> to vector<16x256xf32>
    %12 = arith.addf %9, %11 : vector<16x256xf32>
    %c0_10 = arith.constant 0 : index
    %c0_11 = arith.constant 0 : index
    %13 = vector.load %arg7[%c0_10, %c0_11] : memref<16x256xf32, #tpu.memory_space<vmem>>, vector<16x256xf32>
    tpu.vector_store %arg7[%c0_10, %c0_11], %12 {strides = array<i32>} : memref<16x256xf32, #tpu.memory_space<vmem>>, vector<16x256xf32>,
    return
  }
  func.func @transform_0(%arg0: i32, %arg1: i32) -> (i32, i32) {
    %c0_i32 = arith.constant 0 : i32
    %c0_i32_0 = arith.constant 0 : i32
    return %arg1, %c0_i32 : i32, i32
  }
  func.func @transform_1(%arg0: i32, %arg1: i32) -> (i32, i32) {
    %c0_i32 = arith.constant 0 : i32
    %c0_i32_0 = arith.constant 0 : i32
    %c0_i32_1 = arith.constant 0 : i32
    return %c0_i32, %c0_i32_0 : i32, i32
  }
  func.func @transform_2(%arg0: i32, %arg1: i32) -> (i32, i32) {
    %c0_i32 = arith.constant 0 : i32
    %c0_i32_0 = arith.constant 0 : i32
    %c0_i32_1 = arith.constant 0 : i32
    return %c0_i32, %c0_i32_0 : i32, i32
  }
  func.func @transform_3(%arg0: i32, %arg1: i32) -> (i32, i32) {
    %c0_i32 = arith.constant 0 : i32
    %c0_i32_0 = arith.constant 0 : i32
    return %c0_i32, %arg0 : i32, i32
  }
  func.func @transform_4(%arg0: i32, %arg1: i32) -> (i32, i32) {
    %c0_i32 = arith.constant 0 : i32
    %c0_i32_0 = arith.constant 0 : i32
    return %c0_i32, %arg0 : i32, i32
  }
  func.func @transform_5(%arg0: i32, %arg1: i32) -> (i32, i32) {
    %c0_i32 = arith.constant 0 : i32
    return %arg1, %arg0 : i32, i32
  }
}

</mosaic_0001>

<bundles_post_ra>
// kernel: fnn_lm_forward.1
= control target key start
LH: loop header
LB: loop body
LE: loop exit
PB: predicated region body
PF: predicated region fallthrough
CT: control target
= control target key end

     0   :  { %v335_v0 = vmov 0.0   ;;  %vm336_vm0 = vmmov 0   ;;  %v337_v16 = vmov 0   ;;  %vm204_vm1 = vcmask 523264   ;;  %s437_s1 = inlined_call_operand.vmem [shape: bf16[128,64], index: 1, kind: input, shape index: {}]   ;;  %s438_s0 = inlined_call_operand.vmem [shape: bf16[16,128], index: 0, kind: input, shape index: {}]   ;;  %s439_s3 = inlined_call_operand.vmem [shape: bf16[64,256], index: 3, kind: input, shape index: {}]   ;;  %s440_s2 = inlined_call_operand.vmem [shape: f32[1,64], index: 2, kind: input, shape index: {}]   ;;  %s441_s4 = inlined_call_operand.vmem [shape: f32[1,256], index: 4, kind: input, shape index: {}]   ;;  %s442_s5 = inlined_call_operand.vmem [shape: f32[16,256], index: 5, kind: output, shape index: {}]  }
   0x1   :  { %287 = vmatprep.subr.bf16.mxu0 %v335_v0  ;;  %v310_v1 = vld [vmem:[%s437_s1] sm:$0xff]   ;;  %303 = vmatprep.mubr.msk.bf16.mxu0 %vm336_vm0, %v335_v0  ;;  %v311_v2 = vld [vmem:[%s437_s1 + $0x8] sm:$0xff]   ;;  %v312_v3 = vld [vmem:[%s437_s1 + $0x10] sm:$0xff]   ;;  %v154_v29 = vlaneseq }
   0x2   :  { %288 = vmatpush3.bf16.msra.mxu0 %v310_v1  ;;  %v313_v4 = vld [vmem:[%s437_s1 + $0x18] sm:$0xff]   ;;  %v314_v5 = vld [vmem:[%s437_s1 + $0x20] sm:$0xff]   ;;  %v315_v6 = vld [vmem:[%s437_s1 + $0x28] sm:$0xff]   ;;  %240 = vmatprep.mubr.bf16.mxu1 %v337_v16 }
   0x3   :  { %289 = vmatprep.subr.bf16.mxu0 %v335_v0  ;;  %v316_v7 = vld [vmem:[%s437_s1 + $0x30] sm:$0xff]   ;;  %v317_v8 = vld [vmem:[%s437_s1 + $0x38] sm:$0xff]   ;;  %v318_v9 = vld [vmem:[%s438_s0] sm:$0xff]   ;;  %v155_v30 = vshrl.u32 %v154_v29, 7 }
   0x4   :  { %v319_v10 = vld [vmem:[%s439_s3 + $0x4] ss:$8 sps:$4 sm:$0xff]   ;;  %v321_v11 = vld [vmem:[%s439_s3] ss:$8 sps:$4 sm:$0xff]   ;;  %v322_v12 = vld [vmem:[%s439_s3 + $0x14] ss:$8 sps:$4 sm:$0xff]  }
   0x5   :  { %208 = vmatprep.subr.bf16.mxu1 %v319_v10  ;;  %v324_v13 = vld [vmem:[%s439_s3 + $0x10] ss:$8 sps:$4 sm:$0xff]   ;;  %v325_v14 = vld [vmem:[%s439_s3 + $0x24] ss:$8 sps:$4 sm:$0xff]   ;;  %v327_v15 = vld [vmem:[%s439_s3 + $0x20] ss:$8 sps:$4 sm:$0xff]  }
   0x6   :  { %290 = vmatpush3.bf16.msra.mxu0 %v311_v2  ;;  %209 = vmatpush1.bf16.msra.mxu1 %v321_v11  ;;  %v328_v17 = vld [vmem:[%s439_s3 + $0x34] ss:$8 sps:$4 sm:$0xff]   ;;  %v330_v18 = vld [vmem:[%s439_s3 + $0x30] ss:$8 sps:$4 sm:$0xff]   ;;  %v259_v19 = vld [vmem:[%s440_s2] ss:$0 sm:$0xff] }
   0x7   :  { %291 = vmatprep.subr.bf16.mxu0 %v335_v0  ;;  %210 = vmatprep.subr.bf16.mxu1 %v322_v12  ;;  %v156_v31 = vsub.s32 0, %v155_v30  ;;  %v152_v32 = vld [vmem:[%s441_s4] sm:$0x3]  ;;  %v160_v33 = vsub.s32 1, %v155_v30 }
   0x9   :  { %v157_v34 = vrot.slane %v152_v32, %v156_v31  ;;  %v161_v35 = vrot.slane %v152_v32, %v160_v33 }
   0xa   :  { %292 = vmatpush3.bf16.msra.mxu0 %v312_v3  ;;  %211 = vmatpush1.bf16.msra.mxu1 %v324_v13 }
   0xb   :  { %293 = vmatprep.subr.bf16.mxu0 %v335_v0  ;;  %212 = vmatprep.subr.bf16.mxu1 %v325_v14 }
   0xe   :  { %294 = vmatpush3.bf16.msra.mxu0 %v313_v4  ;;  %213 = vmatpush1.bf16.msra.mxu1 %v327_v15 }
   0xf   :  { %295 = vmatprep.subr.bf16.mxu0 %v335_v0  ;;  %214 = vmatprep.subr.bf16.mxu1 %v328_v17 }
  0x12   :  { %296 = vmatpush3.bf16.msra.mxu0 %v314_v5  ;;  %215 = vmatpush1.bf16.msra.mxu1 %v330_v18 }
  0x13   :  { %297 = vmatprep.subr.bf16.mxu0 %v335_v0 }
  0x16   :  { %298 = vmatpush3.bf16.msra.mxu0 %v315_v6 }
  0x17   :  { %299 = vmatprep.subr.bf16.mxu0 %v335_v0 }
  0x1a   :  { %300 = vmatpush3.bf16.msra.mxu0 %v316_v7 }
  0x1b   :  { %301 = vmatprep.subr.bf16.mxu0 %v335_v0 }
  0x1e   :  { %302 = vmatpush3.bf16.msra.mxu0 %v317_v8 }
  0x21   :  { %304 = vmatmul.mubr.bf16.vlgmr.msra.gmra.mrb[0].mxu0 %v318_v9 }
  0xf4   :  { %v134_v20 = vpop.f32.mrb[0].mxu0 }
  0xf5   :  { %v135_v21 = vadd.f32 %v259_v19, %v134_v20  ;;  %v305_v22 = vpop.f32.mrb[1].mxu0 }
  0xf6   :  { %v137_v23 = vpop.f32.mrb[2].mxu0 }
  0xf7   :  { %v138_v24 = vadd.f32 %v259_v19, %v137_v23  ;;  %v306_v25 = vpop.f32.mrb[3].mxu0  ;;  %331 = vtanh.f32 %v135_v21 }
  0xf9   :  { %333 = vtanh.f32 %v138_v24 }
 0x101   :  { %v332_v26 = vpop.eup %331 }
 0x103   :  { %v334_v27 = vpop.eup %333 }
 0x104   :  { %v143_v28 = vpack.c.bf16 %v334_v27, %v332_v26 }
 0x106   :  { %277 = vmatmul.mubr.msk.bf16.vlgmr.msra.gmra.mrb[0].mxu1 %vm204_vm1, %v143_v28 }
 0x1d9   :  { %v242_v36 = vpop.f32.mrb[0].mxu1 }
 0x1da   :  { %v243_v37 = vadd.f32 %v242_v36, %v157_v34  ;;  %v244_v38 = vpop.f32.mrb[1].mxu1 }
 0x1db   :  { %v245_v39 = vadd.f32 %v244_v38, %v161_v35  ;;  %v246_v40 = vpop.f32.mrb[2].mxu1 }
 0x1dc   :  { %251 = vst [vmem:[%s442_s5] sm:$0xff] %v243_v37  ;;  %v247_v41 = vadd.f32 %v246_v40, %v157_v34  ;;  %v248_v42 = vpop.f32.mrb[3].mxu1 }
 0x1dd   :  { %252 = vst [vmem:[%s442_s5 + $0x8] sm:$0xff] %v245_v39  ;;  %v249_v43 = vadd.f32 %v248_v42, %v161_v35 }
 0x1de   :  { %253 = vst [vmem:[%s442_s5 + $0x10] sm:$0xff] %v247_v41 }
 0x1df   :  { %254 = vst [vmem:[%s442_s5 + $0x18] sm:$0xff] %v249_v43 }

</bundles_post_ra>
